<compile_context>
chip_gen: v7x
topology: tpu7x:2x2x1
jax: 0.10.0
libtpu: 0.0.40
codegen_flags: <defaults>
</compile_context>

<pallas_src>
import functools

import jax
import jax.numpy as jnp
from jax.experimental import pallas as pl
from jax.experimental.pallas import tpu as pltpu


# ----------------------------------------------------------------------------- kernel


def _uv_loss_kernel(uv_ref, pool_ref, sig_ref, sh_ref, out_ref, *,
                    block_size, frames_per_row, chunk_f):
    """One row-block: per-row sums of squares of (s_h*mask) and (signal*mask)."""
    rows = out_ref.shape[0]
    chunk_t = chunk_f * block_size
    n_full = frames_per_row // chunk_f
    rem = frames_per_row - n_full * chunk_f

    pool = pool_ref[...]                                     # (chunk_t, chunk_f) 0/1

    def chunk_energy(f0):
        # frames [f0, f0+chunk_f) of every row; all offsets are compile-time constants
        t0 = f0 * block_size
        sg = sig_ref[:, pl.ds(t0, chunk_t)].astype(jnp.float32)
        sh = sh_ref[:, pl.ds(t0, chunk_t)].astype(jnp.float32)
        uv = uv_ref[:, pl.ds(f0, chunk_f)].astype(jnp.float32)
        w = uv * uv
        # per-frame sum of squares via the (otherwise idle) MXU
        num = w * jnp.dot(sh * sh, pool, preferred_element_type=jnp.float32)
        den = w * jnp.dot(sg * sg, pool, preferred_element_type=jnp.float32)
        return num, den

    acc_num = jnp.zeros((rows, chunk_f), jnp.float32)
    acc_den = jnp.zeros((rows, chunk_f), jnp.float32)
    for c in range(n_full):                                  # static unroll
        dn, dd = chunk_energy(c * chunk_f)
        acc_num = acc_num + dn
        acc_den = acc_den + dd

    if rem:
        # Ragged frame tail inside the row: process one overlapping chunk whose start
        # is clamped in-bounds (real data only) and statically mask the frames that
        # were already counted by the last full chunk.
        dn, dd = chunk_energy(frames_per_row - chunk_f)
        keep = (jax.lax.broadcasted_iota(jnp.int32, (1, chunk_f), 1)
                >= (chunk_f - rem))
        acc_num = acc_num + jnp.where(keep, dn, 0.0)
        acc_den = acc_den + jnp.where(keep, dd, 0.0)

    out_ref[:, 0:1] = jnp.sum(acc_num, axis=1, keepdims=True)   # ||s_h*mask||^2 per row
    out_ref[:, 1:2] = jnp.sum(acc_den, axis=1, keepdims=True)   # ||signal*mask||^2


# ---------------------------------------------------------------------------- wrapper


def _vmem_capacity_bytes():
    try:
        info = pltpu.get_tpu_info()
        cap = getattr(info, "vmem_capacity_bytes", None)
        if cap:
            return int(cap)
    except Exception:
        pass
    return 128 << 20


def _pick_fold(B, F, T, bytes_ps, vmem_budget):
    """Divisor r of F for the contiguous fold (B,T)->(B*r, T/r)."""
    def fits(r):
        rows_blk = min(8, B * r)
        # both streams, double-buffered, for a minimum (8-row) block
        return 2 * rows_blk * (T // r) * bytes_ps <= vmem_budget // 2

    divisors = [d for d in range(1, F + 1) if F % d == 0]
    good = [d for d in divisors if B * d >= 8 and fits(d)]
    if good:
        # keep rows reasonably wide (>=128 frames) when possible, else fold just enough
        wide = [d for d in good if F // d >= 128]
        return max(wide) if wide else min(good)
    fitting = [d for d in divisors if fits(d)]
    return fitting[-1] if fitting else divisors[-1]


def uv_loss(signal, s_h, uv_true, block_size, eps=1e-5, *,
            max_tile_rows=None, max_chunk_frames=128):
    """signal, s_h: (B, T); uv_true: (B, F) with T == F * block_size."""
    B, T = signal.shape
    Bu, F = uv_true.shape
    assert B == Bu and T == F * block_size, "time length must equal frames * block_size"

    if not jnp.issubdtype(uv_true.dtype, jnp.floating):
        uv_true = uv_true.astype(jnp.float32)

    # ---- per-generation VMEM budget (v7x has 64 MiB/TC, v5e/v6e have 128 MiB) ----
    cap = _vmem_capacity_bytes()
    budget = (40 << 20) if cap <= (64 << 20) else (96 << 20)

    # ---- fold time into rows: sublane utilisation + row-tiling granularity ----
    bytes_ps = signal.dtype.itemsize + s_h.dtype.itemsize        # both streams
    r = _pick_fold(B, F, T, bytes_ps, budget)
    rows_total = B * r
    Fp, Tp = F // r, T // r
    sig2 = signal.reshape(rows_total, Tp)                        # contiguous: no copy
    sh2 = s_h.reshape(rows_total, Tp)
    uv2 = uv_true.reshape(rows_total, Fp)

    # ---- fixed-size frame-pooling matrix (decoupled from the streamed tile size) ----
    cf_budget = int((((4 << 20) // 4) // max(block_size, 1)) ** 0.5)
    chunk_f = max(1, min(128, Fp, int(max_chunk_frames), cf_budget))
    if 8 < chunk_f < Fp:
        chunk_f = (chunk_f // 8) * 8
    chunk_t = chunk_f * block_size
    pool = (jnp.arange(chunk_t, dtype=jnp.int32)[:, None] // block_size
            == jnp.arange(chunk_f, dtype=jnp.int32)[None, :]).astype(jnp.float32)

    # ---- row-block size from the VMEM byte budget (multi-MiB grid steps) ----
    per_row = (2 * Tp * bytes_ps                      # signal + s_h, double-buffered
               + 2 * Fp * uv2.dtype.itemsize          # uv flags, double-buffered
               + 5 * chunk_t * 4)                     # in-kernel f32 temporaries
    fixed = 3 * chunk_t * chunk_f * 4 + (2 << 20)     # pooling matrix + headroom
    avail = max(budget - fixed, per_row * min(8, rows_total))
    rows_fit = max(1, avail // per_row)
    if max_tile_rows is not None:
        rows_fit = min(rows_fit, int(max_tile_rows))
    if rows_total <= 8 or rows_fit >= rows_total:
        tile_rows = rows_total
    else:
        tile_rows = max(8, min((int(rows_fit) // 8) * 8, (rows_total // 8) * 8))
    n_blocks = pl.cdiv(rows_total, tile_rows)

    need = fixed + per_row * tile_rows + (4 << 20)
    vmem_limit = int(min(max(need, 16 << 20), int(cap * 0.9)))

    kernel = functools.partial(_uv_loss_kernel, block_size=block_size,
                               frames_per_row=Fp, chunk_f=chunk_f)

    out = pl.pallas_call(
        kernel,
        out_shape=jax.ShapeDtypeStruct((rows_total, 2), jnp.float32),
        grid=(n_blocks,),
        in_specs=[
            pl.BlockSpec((tile_rows, Fp), lambda i: (i, 0)),      # uv flags
            pl.BlockSpec((chunk_t, chunk_f), lambda i: (0, 0)),   # pooling matrix
            pl.BlockSpec((tile_rows, Tp), lambda i: (i, 0)),      # signal
            pl.BlockSpec((tile_rows, Tp), lambda i: (i, 0)),      # s_h
        ],
        out_specs=pl.BlockSpec((tile_rows, 2), lambda i: (i, 0)),
        compiler_params=pltpu.CompilerParams(
            dimension_semantics=("parallel",),                    # TC-sharded on v7x
            vmem_limit_bytes=vmem_limit),
    )(uv2, pool, sig2, sh2)

    # Cheap finalize: undo the fold, sqrt / ratio / mean.
    num_sq = jnp.sum(out[:, 0].reshape(B, r), axis=1)
    den_sq = jnp.sum(out[:, 1].reshape(B, r), axis=1)
    return jnp.mean(jnp.sqrt(num_sq) / (jnp.sqrt(den_sq) + float(eps)))


# -------------------------------------------------------------------------- reference


def _uv_loss_ref(signal, s_h, uv_true, block_size, eps=1e-5):
    """Pure-JAX mirror of the PyTorch forward (f32 math)."""
    f32 = jnp.float32
    mask = jnp.repeat(uv_true.astype(f32), block_size, axis=1)
    num = jnp.linalg.norm(s_h.astype(f32) * mask, axis=1)
    den = jnp.linalg.norm(signal.astype(f32) * mask, axis=1)
    return jnp.mean(num / (den + eps))


# ------------------------------------------------------------------------------- main


if __name__ == "__main__":
    def check(name, B, F, bs, dtype=jnp.float32, seed=0, **kw):
        T = F * bs
        k1, k2, k3 = jax.random.split(jax.random.PRNGKey(seed), 3)
        sig = jax.random.normal(k1, (B, T), dtype=jnp.float32).astype(dtype)
        sh = jax.random.normal(k2, (B, T), dtype=jnp.float32).astype(dtype)
        uv = jax.random.bernoulli(k3, p=0.7, shape=(B, F)).astype(jnp.float32)
        got = jax.block_until_ready(uv_loss(sig, sh, uv, bs, **kw))
        want = _uv_loss_ref(sig, sh, uv, bs)
        assert jnp.allclose(got, want, rtol=2e-5, atol=1e-6), (name, got, want)

    # 1) tiny single-block path
    check("tiny", B=2, F=8, bs=16, seed=0)
    # 2) folded path (B=2 -> 8 rows), single pooling chunk
    check("folded", B=2, F=200, bs=16, seed=1)
    # 3) multi-block grid, ragged last row-block, many unrolled chunks + overlap tail
    check("tiled_ragged", B=3, F=250, bs=8, seed=2, max_tile_rows=8, max_chunk_frames=4)
    # 4) bf16 streams (half the HBM bytes), f32 accumulation in-kernel
    check("bf16", B=2, F=96, bs=32, seed=3, dtype=jnp.bfloat16)

    print("KERNEL_OK")
</pallas_src>

<mosaic_0001>
module attributes {stable_mosaic.version = 11 : i64} {
  func.func @_uv_loss_kernel(%arg0: i32, %arg1: memref<8x2xf32, #tpu.memory_space<vmem>>, %arg2: memref<32x2xf32, #tpu.memory_space<vmem>>, %arg3: memref<8x32xf32, #tpu.memory_space<vmem>>, %arg4: memref<8x32xf32, #tpu.memory_space<vmem>>, %arg5: memref<8x2xf32, #tpu.memory_space<vmem>>) attributes {dimension_semantics = [#tpu.dimension_semantics<parallel>], iteration_bounds = array<i64: 1>, scalar_prefetch = 0 : i64, scratch_operands = 0 : i64, tpu.core_type = #tpu.core_type<tc>, window_params = [{transform_indices = @transform_0, window_bounds = array<i64: 8, 2>}, {pipeline_mode = #tpu.pipeline_mode<synchronous>, transform_indices = @transform_1, window_bounds = array<i64: 32, 2>}, {transform_indices = @transform_2, window_bounds = array<i64: 8, 32>}, {transform_indices = @transform_3, window_bounds = array<i64: 8, 32>}, {transform_indices = @transform_4, window_bounds = array<i64: 8, 2>}]} {
    %c0 = arith.constant 0 : index
    %c0_0 = arith.constant 0 : index
    %0 = vector.load %arg2[%c0, %c0_0] : memref<32x2xf32, #tpu.memory_space<vmem>>, vector<32x2xf32>
    %cst = arith.constant 0.000000e+00 : f32
    %1 = vector.broadcast %cst : f32 to vector<8x2xf32>
    %cst_1 = arith.constant 0.000000e+00 : f32
    %2 = vector.broadcast %cst_1 : f32 to vector<8x2xf32>
    %c0_2 = arith.constant 0 : index
    %c0_3 = arith.constant 0 : index
    %3 = vector.load %arg3[%c0_2, %c0_3] : memref<8x32xf32, #tpu.memory_space<vmem>>, vector<8x32xf32>
    %c0_4 = arith.constant 0 : index
    %c0_5 = arith.constant 0 : index
    %4 = vector.load %arg4[%c0_4, %c0_5] : memref<8x32xf32, #tpu.memory_space<vmem>>, vector<8x32xf32>
    %c0_6 = arith.constant 0 : index
    %c0_7 = arith.constant 0 : index
    %5 = vector.load %arg1[%c0_6, %c0_7] : memref<8x2xf32, #tpu.memory_space<vmem>>, vector<8x2xf32>
    %6 = arith.mulf %5, %5 : vector<8x2xf32>
    %7 = arith.mulf %4, %4 : vector<8x32xf32>
    %cst_8 = arith.constant dense<0.000000e+00> : vector<8x2xf32>
    %8 = tpu.matmul %7, %0, %cst_8 {dimension_numbers = #tpu.dot_dimension_numbers<[1], [0], [0], [1], [0, 0, 1, 1], [], []>} : vector<8x32xf32>, vector<32x2xf32>, vector<8x2xf32> -> vector<8x2xf32>
    %9 = arith.mulf %6, %8 : vector<8x2xf32>
    %10 = arith.mulf %3, %3 : vector<8x32xf32>
    %cst_9 = arith.constant dense<0.000000e+00> : vector<8x2xf32>
    %11 = tpu.matmul %10, %0, %cst_9 {dimension_numbers = #tpu.dot_dimension_numbers<[1], [0], [0], [1], [0, 0, 1, 1], [], []>} : vector<8x32xf32>, vector<32x2xf32>, vector<8x2xf32> -> vector<8x2xf32>
    %12 = arith.mulf %6, %11 : vector<8x2xf32>
    %13 = arith.addf %1, %9 : vector<8x2xf32>
    %14 = arith.addf %2, %12 : vector<8x2xf32>
    %cst_10 = arith.constant dense<0.000000e+00> : vector<8xf32>
    %15 = vector.multi_reduction <add>, %13, %cst_10 [1] : vector<8x2xf32> to vector<8xf32>
    %16 = vector.shape_cast %15 : vector<8xf32> to vector<8x1xf32>
    %c0_11 = arith.constant 0 : index
    %c0_12 = arith.constant 0 : index
    %17 = vector.load %arg5[%c0_11, %c0_12] : memref<8x2xf32, #tpu.memory_space<vmem>>, vector<8x1xf32>
    tpu.vector_store %arg5[%c0_11, %c0_12], %16 {strides = array<i32>} : memref<8x2xf32, #tpu.memory_space<vmem>>, vector<8x1xf32>,
    %cst_13 = arith.constant dense<0.000000e+00> : vector<8xf32>
    %18 = vector.multi_reduction <add>, %14, %cst_13 [1] : vector<8x2xf32> to vector<8xf32>
    %19 = vector.shape_cast %18 : vector<8xf32> to vector<8x1xf32>
    %c0_14 = arith.constant 0 : index
    %c1 = arith.constant 1 : index
    %20 = vector.load %arg5[%c0_14, %c1] : memref<8x2xf32, #tpu.memory_space<vmem>>, vector<8x1xf32>
    tpu.vector_store %arg5[%c0_14, %c1], %19 {strides = array<i32>} : memref<8x2xf32, #tpu.memory_space<vmem>>, vector<8x1xf32>,
    return
  }
  func.func @transform_0(%arg0: i32) -> (i32, i32) {
    %c0_i32 = arith.constant 0 : i32
    %c0_i32_0 = arith.constant 0 : i32
    return %arg0, %c0_i32 : i32, i32
  }
  func.func @transform_1(%arg0: i32) -> (i32, i32) {
    %c0_i32 = arith.constant 0 : i32
    %c0_i32_0 = arith.constant 0 : i32
    %c0_i32_1 = arith.constant 0 : i32
    return %c0_i32, %c0_i32_0 : i32, i32
  }
  func.func @transform_2(%arg0: i32) -> (i32, i32) {
    %c0_i32 = arith.constant 0 : i32
    %c0_i32_0 = arith.constant 0 : i32
    return %arg0, %c0_i32 : i32, i32
  }
  func.func @transform_3(%arg0: i32) -> (i32, i32) {
    %c0_i32 = arith.constant 0 : i32
    %c0_i32_0 = arith.constant 0 : i32
    return %arg0, %c0_i32 : i32, i32
  }
  func.func @transform_4(%arg0: i32) -> (i32, i32) {
    %c0_i32 = arith.constant 0 : i32
    %c0_i32_0 = arith.constant 0 : i32
    return %arg0, %c0_i32 : i32, i32
  }
}

</mosaic_0001>

<bundles_post_ra>
// kernel: tpu_custom_call.1
= control target key start
LH: loop header
LB: loop body
LE: loop exit
PB: predicated region body
PF: predicated region fallthrough
CT: control target
= control target key end

     0   :  { %v242_v0 = vmov 0.0|0.0   ;;  %vm243_vm0 = vmmov 0   ;;  %v244_v6 = vmov 0.0   ;;  %vm26_vm1 = vcmask 261120   ;;  %s297_s1 = inlined_call_operand.vmem [shape: f32[32,2], index: 1, kind: input, shape index: {}]   ;;  %s298_s3 = inlined_call_operand.vmem [shape: f32[8,32], index: 3, kind: input, shape index: {}]   ;;  %s299_s2 = inlined_call_operand.vmem [shape: f32[8,32], index: 2, kind: input, shape index: {}]   ;;  %s300_s0 = inlined_call_operand.vmem [shape: f32[8,2], index: 0, kind: input, shape index: {}]   ;;  %s301_s4 = inlined_call_operand.vmem [shape: f32[8,2], index: 4, kind: output, shape index: {}]  }
   0x1   :  { %227 = vmatprep.subr.bf16.mxu0 %v242_v0  ;;  %v17_v1 = vld [vmem:[%s297_s1] sm:$0xff]  ;;  %v18_v2 = vld [vmem:[%s297_s1 + $0x8] sm:$0xff]  ;;  %233 = vmatprep.subr.bf16.mxu1 %v242_v0  ;;  %v19_v3 = vld [vmem:[%s297_s1 + $0x10] sm:$0xff]  ;;  %vm178_vm2 = vcmask 15360   ;;  %vm182_vm3 = vcmask 7168   ;;  %vm187_vm4 = vcmask 15368  }
   0x2   :  { %v228_v4 = vpack.c.bf16 %v18_v2, %v17_v1  ;;  %v20_v5 = vld [vmem:[%s297_s1 + $0x18] sm:$0xff]  ;;  %213 = vmatprep.mubr.msk.f32.mxu0 %vm243_vm0, %v244_v6  ;;  %224 = vmatprep.mubr.msk.f32.mxu1 %vm243_vm0, %v244_v6  ;;  %v22_v8 = vld [vmem:[%s298_s3] sm:$0xff] }
   0x3   :  { %v231_v7 = vpack.c.bf16 %v20_v5, %v19_v3  ;;  %v21_v9 = vld [vmem:[%s299_s2] sm:$0xff]  ;;  %v25_v10 = vmul.f32 %v22_v8, %v22_v8 }
   0x4   :  { %229 = vmatpush3.bf16.msra.mxu0 %v228_v4  ;;  %235 = vmatpush3.bf16.msra.mxu1 %v228_v4  ;;  %v101_v11 = vmul.f32 %v21_v9, %v21_v9  ;;  %v23_v12 = vld [vmem:[%s300_s0] sm:$0xff] }
   0x5   :  { %230 = vmatprep.subr.bf16.mxu0 %v242_v0  ;;  %236 = vmatprep.subr.bf16.mxu1 %v242_v0  ;;  %v24_v13 = vmul.f32 %v23_v12, %v23_v12 }
   0x8   :  { %232 = vmatpush3.bf16.msra.mxu0 %v231_v7  ;;  %238 = vmatpush3.bf16.msra.mxu1 %v231_v7 }
   0xb   :  { %214 = vmatmul.mubr.msk.f32.vlgmr.msra.gmra.mrb[0].mxu0 %vm26_vm1, %v25_v10  ;;  %225 = vmatmul.mubr.msk.f32.vlgmr.msra.gmra.mrb[0].mxu1 %vm26_vm1, %v101_v11 }
  0xde   :  { %v96_v14 = vpop.f32.mrb[0].mxu0  ;;  %v171_v15 = vpop.f32.mrb[0].mxu1 }
  0xdf   :  { %v100_v16 = vmul.f32 %v96_v14, %v24_v13  ;;  %v215_v17 = vpop.f32.mrb[1].mxu0  ;;  %v175_v18 = vmul.f32 %v171_v15, %v24_v13  ;;  %v226_v19 = vpop.f32.mrb[1].mxu1 }
  0xe1   :  { %v179_v20 = vsel %vm178_vm2, %v100_v16, 0.0  ;;  %v184_v21 = vsel %vm178_vm2, %v175_v18, 0.0 }
  0xe2   :  { %180 = vadd.xlane.f32.xlu0 %v179_v20 }
  0xe6   :  { %185 = vadd.xlane.f32.xlu0 %v184_v21 }
 0x16f   :  { %v181_v22 = vpop.xlane.xlu0 %180 }
 0x170   :  { %183 = vst.msk [vmem:[%s301_s4] sm:$0xff] %vm182_vm3, %v181_v22 }
 0x173   :  { %v186_v23 = vpop.xlane.xlu0 %185 }
 0x174   :  { %188 = vst.msk [vmem:[%s301_s4] sm:$0xff] %vm187_vm4, %v186_v23 }

</bundles_post_ra>
